<compile_context>
chip_gen: v7x
topology: tpu7x:2x2x1
jax: 0.10.0
libtpu: 0.0.40
codegen_flags: <defaults>
</compile_context>

<pallas_src>
import jax
import jax.numpy as jnp
from jax.experimental import pallas as pl
from jax.experimental.pallas import tpu as pltpu


def pvbnet_kernel(x_ref, ew_ref, wm_ref, wv_ref, bc_ref, out_ref):
    # x_ref:   (V, TB, K)    K = C*H*W  (GAP folded into the contraction)
    # ew_ref:  (K, F)        encoder projection with 1/HW pre-folded
    # wm_ref:  (F, n_out)    folded FC weights acting on the mean half
    # wv_ref:  (F, n_out)    folded FC weights acting on the variance half
    # bc_ref:  (1, n_out)    folded FC bias (encoder bias already folded in)
    # out_ref: (TB, n_out)
    V, TB, K = x_ref.shape
    F = ew_ref.shape[1]
    inv_v = 1.0 / float(V)
    inv_vm1 = 1.0 / float(V - 1)        # torch.var default: unbiased (V >= 2)

    # One batched MXU matmul for all V views (leading-dim reshapes are free).
    xb = x_ref[...].reshape(V * TB, K)
    feats = jnp.dot(xb, ew_ref[...],
                    preferred_element_type=jnp.float32)        # (V*TB, F) f32
    feats = feats.reshape(V, TB, F)                            # (V, TB, F)

    mean = jnp.sum(feats, axis=0) * inv_v                      # (TB, F)
    diff = feats - mean                                        # broadcast over V
    var = jnp.sum(diff * diff, axis=0) * inv_vm1               # (TB, F)

    # Folded FC stack: cat([mean, var]) @ Wc + bc, with Wc pre-split.
    out_ref[...] = (jnp.dot(mean, wm_ref[...], preferred_element_type=jnp.float32)
                    + jnp.dot(var, wv_ref[...], preferred_element_type=jnp.float32)
                    + bc_ref[...])                             # (TB, n_out)


def _round_up(a, m):
    return -(-a // m) * m


def pvbnet_forward(x_nchw_views, params, *, batch_tile=512,
                   x_dtype=jnp.bfloat16,
                   vmem_budget_bytes=48 * 1024 * 1024):
    """x_nchw_views: (V, B, C, H, W) float32 — V view images (NCHW), V >= 2."""
    V, B, C, H, W = x_nchw_views.shape
    assert V >= 2, "torch.var(ddof=1) over views requires at least 2 views"
    HW = H * W
    K = C * HW
    F = params["enc_w"].shape[1]

    # --- GAP fold: pooling becomes part of the encoder contraction ---------
    # Row (c*HW + s) of ew_hw equals enc_w[c] / HW, matching x flattened (C, HW).
    ew_hw = jnp.repeat(params["enc_w"] / float(HW), HW, axis=0)    # (K, F)

    # --- fold the 5 activation-free Linear layers into one affine map (exact)
    wc = (params["w1"] @ params["w2"] @ params["w3"]
          @ params["w4"] @ params["w5"])                           # (2F, n_out)
    bc = ((((params["b1"] @ params["w2"] + params["b2"]) @ params["w3"]
            + params["b3"]) @ params["w4"] + params["b4"])
          @ params["w5"] + params["b5"])                           # (1, n_out)
    wc_mean = wc[:F]                                               # (F, n_out)
    wc_var = wc[F:]                                                # (F, n_out)
    n_out = wc.shape[1]
    # Encoder bias folded into the final bias (variance is shift-invariant).
    bc_total = bc + params["enc_b"] @ wc_mean                      # (1, n_out)

    # --- dtypes: stream x / encoder weight as bf16, accumulate in f32 -------
    x = x_nchw_views.reshape(V, B, K).astype(x_dtype)
    ew_hw = ew_hw.astype(x_dtype)
    x_bytes = jnp.dtype(x_dtype).itemsize

    # --- batch-tile selection under a v7x-safe VMEM budget ------------------
    b_pad8 = _round_up(B, 8)
    tb = min(batch_tile, b_pad8)
    # v7x megacore: give the "parallel" grid >= 2 steps when the batch allows.
    if b_pad8 // tb < 2 and b_pad8 >= 16:
        tb = _round_up(pl.cdiv(b_pad8, 2), 8)

    def _tile_bytes(t):
        x_tile = 2 * V * t * K * x_bytes                           # double-buffered x
        w_res = K * F * x_bytes + 2 * F * n_out * 4 + n_out * 4    # Buffered(1) weights
        o_tile = 2 * t * max(n_out, 128) * 4                       # output (lane-padded)
        work = 3 * V * t * F * 4                                   # feats/diff/live values
        return x_tile + w_res + o_tile + work

    while tb > 8 and _tile_bytes(tb) > vmem_budget_bytes:
        tb = _round_up(tb // 2, 8)

    B_pad = _round_up(B, tb)
    if B_pad != B:
        x = jnp.pad(x, ((0, 0), (0, B_pad - B), (0, 0)))
    grid = (B_pad // tb,)

    resident = lambda i: (0, 0)
    single = pl.Buffered(1)          # constant index_map -> no second buffer
    vmem_limit = int(min(64 * 1024 * 1024,
                         max(32 * 1024 * 1024, int(_tile_bytes(tb) * 1.3))))

    out = pl.pallas_call(
        pvbnet_kernel,
        out_shape=jax.ShapeDtypeStruct((B_pad, n_out), jnp.float32),
        grid_spec=pltpu.PrefetchScalarGridSpec(
            num_scalar_prefetch=0,
            grid=grid,
            in_specs=[
                pl.BlockSpec((V, tb, K), lambda i: (0, i, 0)),      # x batch tile
                pl.BlockSpec((K, F), resident, pipeline_mode=single),      # ew_hw
                pl.BlockSpec((F, n_out), resident, pipeline_mode=single),  # W (mean half)
                pl.BlockSpec((F, n_out), resident, pipeline_mode=single),  # W (var half)
                pl.BlockSpec((1, n_out), resident, pipeline_mode=single),  # folded bias
            ],
            out_specs=pl.BlockSpec((tb, n_out), lambda i: (i, 0)),
        ),
        compiler_params=pltpu.CompilerParams(
            dimension_semantics=("parallel",),
            vmem_limit_bytes=vmem_limit),
    )(x, ew_hw, wc_mean, wc_var, bc_total)
    return out[:B]


def pvbnet_reference(x_nchw_views, params):
    """Pure-JAX reference mirroring the PyTorch forward (for validation)."""
    pooled = jnp.mean(x_nchw_views, axis=(3, 4))          # (V, B, C)
    feats = (jnp.einsum("vbc,cf->vbf", pooled, params["enc_w"])
             + params["enc_b"])                           # (V, B, F)
    mean = jnp.mean(feats, axis=0)
    var = jnp.var(feats, axis=0, ddof=1)                  # torch.var: unbiased
    out = jnp.concatenate([mean, var], axis=-1)
    for w, b in ((params["w1"], params["b1"]), (params["w2"], params["b2"]),
                 (params["w3"], params["b3"]), (params["w4"], params["b4"]),
                 (params["w5"], params["b5"])):
        out = out @ w + b
    return out


def init_params(key, C, F, fc_dim):
    ks = jax.random.split(key, 12)

    def lin(kw, kb, din, dout):
        bound = 1.0 / jnp.sqrt(din)
        w = jax.random.uniform(kw, (din, dout), jnp.float32, -bound, bound)
        b = jax.random.uniform(kb, (1, dout), jnp.float32, -bound, bound)
        return w, b

    enc_w, enc_b = lin(ks[0], ks[1], C, F)
    w1, b1 = lin(ks[2], ks[3], 2 * fc_dim[0], fc_dim[0])
    w2, b2 = lin(ks[4], ks[5], fc_dim[0], fc_dim[1])
    w3, b3 = lin(ks[6], ks[7], fc_dim[1], fc_dim[2])
    w4, b4 = lin(ks[8], ks[9], fc_dim[2], fc_dim[3])
    w5, b5 = lin(ks[10], ks[11], fc_dim[3], fc_dim[4])
    return dict(enc_w=enc_w, enc_b=enc_b, w1=w1, b1=b1, w2=w2, b2=b2,
                w3=w3, b3=b3, w4=w4, b4=b4, w5=w5, b5=b5)


if __name__ == "__main__":
    # small shapes: V=3 views, batch=2, channels=4, spatial=16x16, feat=32
    V, B, C, H, W = 3, 2, 4, 16, 16
    fc_dim = [32, 16, 8, 4, 1]          # scaled-down [1000, 500, 250, 100, 1]
    F = fc_dim[0]

    key = jax.random.PRNGKey(0)
    kx, kp = jax.random.split(key)
    xs = jax.random.normal(kx, (V, B, C, H, W), jnp.float32)
    params = init_params(kp, C, F, fc_dim)

    ref = pvbnet_reference(xs, params)

    # fp32 input path: tight check against the pure-JAX reference.
    out_f32 = jax.block_until_ready(
        pvbnet_forward(xs, params, x_dtype=jnp.float32))
    assert out_f32.shape == (B, fc_dim[-1]), out_f32.shape
    assert jnp.allclose(out_f32, ref, atol=1e-4, rtol=1e-4), (out_f32, ref)

    # bf16 streaming path (default; halves HBM traffic): looser tolerance.
    out_bf16 = jax.block_until_ready(
        pvbnet_forward(xs, params, x_dtype=jnp.bfloat16))
    assert out_bf16.shape == (B, fc_dim[-1]), out_bf16.shape
    assert jnp.allclose(out_bf16, ref, atol=2e-2, rtol=2e-2), (out_bf16, ref)

    # TODO(synk): the real convnext_model encoder is an external module; a
    # global-average-pool + linear projection stands in for it here.
    print("KERNEL_OK")
</pallas_src>

<mosaic_0001>
module attributes {stable_mosaic.version = 11 : i64} {
  func.func @pvbnet_kernel(%arg0: i32, %arg1: memref<3x8x1024xf32, #tpu.memory_space<vmem>>, %arg2: memref<1024x32xf32, #tpu.memory_space<vmem>>, %arg3: memref<32x1xf32, #tpu.memory_space<vmem>>, %arg4: memref<32x1xf32, #tpu.memory_space<vmem>>, %arg5: memref<1x1xf32, #tpu.memory_space<vmem>>, %arg6: memref<8x1xf32, #tpu.memory_space<vmem>>) attributes {dimension_semantics = [#tpu.dimension_semantics<parallel>], iteration_bounds = array<i64: 1>, scalar_prefetch = 0 : i64, scratch_operands = 0 : i64, tpu.core_type = #tpu.core_type<tc>, window_params = [{transform_indices = @transform_0, window_bounds = array<i64: 3, 8, 1024>}, {pipeline_mode = #tpu.pipeline_mode<synchronous>, transform_indices = @transform_1, window_bounds = array<i64: 1024, 32>}, {pipeline_mode = #tpu.pipeline_mode<synchronous>, transform_indices = @transform_2, window_bounds = array<i64: 32, 1>}, {pipeline_mode = #tpu.pipeline_mode<synchronous>, transform_indices = @transform_3, window_bounds = array<i64: 32, 1>}, {pipeline_mode = #tpu.pipeline_mode<synchronous>, transform_indices = @transform_4, window_bounds = array<i64: 1, 1>}, {transform_indices = @transform_5, window_bounds = array<i64: 8, 1>}]} {
    %c0 = arith.constant 0 : index
    %c0_0 = arith.constant 0 : index
    %c0_1 = arith.constant 0 : index
    %0 = vector.load %arg1[%c0, %c0_0, %c0_1] : memref<3x8x1024xf32, #tpu.memory_space<vmem>>, vector<3x8x1024xf32>
    %1 = vector.shape_cast %0 : vector<3x8x1024xf32> to vector<24x1024xf32>
    %c0_2 = arith.constant 0 : index
    %c0_3 = arith.constant 0 : index
    %2 = vector.load %arg2[%c0_2, %c0_3] : memref<1024x32xf32, #tpu.memory_space<vmem>>, vector<1024x32xf32>
    %cst = arith.constant dense<0.000000e+00> : vector<24x32xf32>
    %3 = tpu.matmul %1, %2, %cst {dimension_numbers = #tpu.dot_dimension_numbers<[1], [0], [0], [1], [0, 0, 1, 1], [], []>} : vector<24x1024xf32>, vector<1024x32xf32>, vector<24x32xf32> -> vector<24x32xf32>
    %4 = vector.shape_cast %3 : vector<24x32xf32> to vector<3x8x32xf32>
    %cst_4 = arith.constant dense<0.000000e+00> : vector<8x32xf32>
    %5 = vector.multi_reduction <add>, %4, %cst_4 [0] : vector<3x8x32xf32> to vector<8x32xf32>
    %cst_5 = arith.constant 0.333333343 : f32
    %6 = vector.broadcast %cst_5 : f32 to vector<8x32xf32>
    %7 = arith.mulf %5, %6 : vector<8x32xf32>
    %8 = vector.shape_cast %7 : vector<8x32xf32> to vector<1x8x32xf32>
    %9 = vector.broadcast %8 : vector<1x8x32xf32> to vector<3x8x32xf32>
    %10 = arith.subf %4, %9 : vector<3x8x32xf32>
    %11 = arith.mulf %10, %10 : vector<3x8x32xf32>
    %cst_6 = arith.constant dense<0.000000e+00> : vector<8x32xf32>
    %12 = vector.multi_reduction <add>, %11, %cst_6 [0] : vector<3x8x32xf32> to vector<8x32xf32>
    %cst_7 = arith.constant 5.000000e-01 : f32
    %13 = vector.broadcast %cst_7 : f32 to vector<8x32xf32>
    %14 = arith.mulf %12, %13 : vector<8x32xf32>
    %c0_8 = arith.constant 0 : index
    %c0_9 = arith.constant 0 : index
    %15 = vector.load %arg3[%c0_8, %c0_9] : memref<32x1xf32, #tpu.memory_space<vmem>>, vector<32x1xf32>
    %cst_10 = arith.constant dense<0.000000e+00> : vector<8x1xf32>
    %16 = tpu.matmul %7, %15, %cst_10 {dimension_numbers = #tpu.dot_dimension_numbers<[1], [0], [0], [1], [0, 0, 1, 1], [], []>} : vector<8x32xf32>, vector<32x1xf32>, vector<8x1xf32> -> vector<8x1xf32>
    %c0_11 = arith.constant 0 : index
    %c0_12 = arith.constant 0 : index
    %17 = vector.load %arg4[%c0_11, %c0_12] : memref<32x1xf32, #tpu.memory_space<vmem>>, vector<32x1xf32>
    %cst_13 = arith.constant dense<0.000000e+00> : vector<8x1xf32>
    %18 = tpu.matmul %14, %17, %cst_13 {dimension_numbers = #tpu.dot_dimension_numbers<[1], [0], [0], [1], [0, 0, 1, 1], [], []>} : vector<8x32xf32>, vector<32x1xf32>, vector<8x1xf32> -> vector<8x1xf32>
    %19 = arith.addf %16, %18 : vector<8x1xf32>
    %c0_14 = arith.constant 0 : index
    %c0_15 = arith.constant 0 : index
    %20 = vector.load %arg5[%c0_14, %c0_15] : memref<1x1xf32, #tpu.memory_space<vmem>>, vector<1x1xf32>
    %21 = vector.broadcast %20 : vector<1x1xf32> to vector<8x1xf32>
    %22 = arith.addf %19, %21 : vector<8x1xf32>
    %c0_16 = arith.constant 0 : index
    %c0_17 = arith.constant 0 : index
    %23 = vector.load %arg6[%c0_16, %c0_17] : memref<8x1xf32, #tpu.memory_space<vmem>>, vector<8x1xf32>
    tpu.vector_store %arg6[%c0_16, %c0_17], %22 {strides = array<i32>} : memref<8x1xf32, #tpu.memory_space<vmem>>, vector<8x1xf32>,
    return
  }
  func.func @transform_0(%arg0: i32) -> (i32, i32, i32) {
    %c0_i32 = arith.constant 0 : i32
    %c0_i32_0 = arith.constant 0 : i32
    %c0_i32_1 = arith.constant 0 : i32
    return %c0_i32, %arg0, %c0_i32_0 : i32, i32, i32
  }
  func.func @transform_1(%arg0: i32) -> (i32, i32) {
    %c0_i32 = arith.constant 0 : i32
    %c0_i32_0 = arith.constant 0 : i32
    %c0_i32_1 = arith.constant 0 : i32
    return %c0_i32, %c0_i32_0 : i32, i32
  }
  func.func @transform_2(%arg0: i32) -> (i32, i32) {
    %c0_i32 = arith.constant 0 : i32
    %c0_i32_0 = arith.constant 0 : i32
    %c0_i32_1 = arith.constant 0 : i32
    return %c0_i32, %c0_i32_0 : i32, i32
  }
  func.func @transform_3(%arg0: i32) -> (i32, i32) {
    %c0_i32 = arith.constant 0 : i32
    %c0_i32_0 = arith.constant 0 : i32
    %c0_i32_1 = arith.constant 0 : i32
    return %c0_i32, %c0_i32_0 : i32, i32
  }
  func.func @transform_4(%arg0: i32) -> (i32, i32) {
    %c0_i32 = arith.constant 0 : i32
    %c0_i32_0 = arith.constant 0 : i32
    %c0_i32_1 = arith.constant 0 : i32
    return %c0_i32, %c0_i32_0 : i32, i32
  }
  func.func @transform_5(%arg0: i32) -> (i32, i32) {
    %c0_i32 = arith.constant 0 : i32
    %c0_i32_0 = arith.constant 0 : i32
    return %arg0, %c0_i32 : i32, i32
  }
}

</mosaic_0001>

<bundles_post_ra>
// kernel: tpu_custom_call.1
= control target key start
LH: loop header
LB: loop body
LE: loop exit
PB: predicated region body
PF: predicated region fallthrough
CT: control target
= control target key end

     0   :  { %vm1024_vm0 = vmmov 0   ;;  %vm494_vm1 = vcmask 261120   ;;  %vm675_vm2 = vcmask 7168   ;;  %s1550_s1 = inlined_call_operand.vmem [shape: f32[1024,32], index: 1, kind: input, shape index: {}]   ;;  %s1551_s0 = inlined_call_operand.vmem [shape: f32[3,8,1024], index: 0, kind: input, shape index: {}]   ;;  %s1552_s2 = inlined_call_operand.vmem [shape: f32[32,1], index: 2, kind: input, shape index: {}]   ;;  %s1553_s3 = inlined_call_operand.vmem [shape: f32[32,1], index: 3, kind: input, shape index: {}]   ;;  %s1554_s4 = inlined_call_operand.<no memory space> [shape: f32[1,1], index: 4, kind: input, shape index: {}]   ;;  %s1555_s5 = inlined_call_operand.vmem [shape: f32[8,1], index: 5, kind: output, shape index: {}]  }
   0x1   :  { %v62_v0 = vld [vmem:[%s1550_s1 + $0x80] sm:$0xff]  ;;  %v63_v1 = vld [vmem:[%s1550_s1 + $0x88] sm:$0xff]  ;;  %v64_v11 = vld [vmem:[%s1550_s1 + $0x90] sm:$0xff] }
   0x2   :  { %v94_v2 = vld [vmem:[%s1550_s1 + $0x180] sm:$0xff]  ;;  %v880_v3 = vpack.c.bf16 %v63_v1, %v62_v0  ;;  %v95_v4 = vld [vmem:[%s1550_s1 + $0x188] sm:$0xff]  ;;  %v65_v13 = vld [vmem:[%s1550_s1 + $0x98] sm:$0xff] }
   0x3   :  { %v46_v5 = vld [vmem:[%s1550_s1] sm:$0xff]  ;;  %v47_v6 = vld [vmem:[%s1550_s1 + $0x8] sm:$0xff]  ;;  %v912_v7 = vpack.c.bf16 %v95_v4, %v94_v2  ;;  %v96_v14 = vld [vmem:[%s1550_s1 + $0x190] sm:$0xff]  ;;  %v884_v16 = vpack.c.bf16 %v65_v13, %v64_v11 }
   0x4   :  { %v882_v8 = vpack.c.bf16 %v47_v6, %v46_v5  ;;  %v78_v9 = vld [vmem:[%s1550_s1 + $0x100] sm:$0xff]  ;;  %v79_v10 = vld [vmem:[%s1550_s1 + $0x108] sm:$0xff]  ;;  %881 = vmatprep.subr.bf16.mxu0 %v880_v3  ;;  %v97_v15 = vld [vmem:[%s1550_s1 + $0x198] sm:$0xff] }
   0x5   :  { %v914_v12 = vpack.c.bf16 %v79_v10, %v78_v9  ;;  %913 = vmatprep.subr.bf16.mxu1 %v912_v7  ;;  %v916_v17 = vpack.c.bf16 %v97_v15, %v96_v14  ;;  %v48_v18 = vld [vmem:[%s1550_s1 + $0x10] sm:$0xff]  ;;  %v49_v19 = vld [vmem:[%s1550_s1 + $0x18] sm:$0xff]  ;;  %v66_v23 = vld [vmem:[%s1550_s1 + $0xa0] sm:$0xff] }
   0x6   :  { %883 = vmatpush3.bf16.msra.mxu0 %v882_v8  ;;  %v80_v20 = vld [vmem:[%s1550_s1 + $0x110] sm:$0xff]  ;;  %v886_v21 = vpack.c.bf16 %v49_v19, %v48_v18  ;;  %v81_v22 = vld [vmem:[%s1550_s1 + $0x118] sm:$0xff]  ;;  %v67_v24 = vld [vmem:[%s1550_s1 + $0xa8] sm:$0xff] }
   0x7   :  { %915 = vmatpush3.bf16.msra.mxu1 %v914_v12  ;;  %885 = vmatprep.subr.bf16.mxu0 %v884_v16  ;;  %v918_v25 = vpack.c.bf16 %v81_v22, %v80_v20  ;;  %v888_v26 = vpack.c.bf16 %v67_v24, %v66_v23  ;;  %v98_v27 = vld [vmem:[%s1550_s1 + $0x1a0] sm:$0xff]  ;;  %v99_v28 = vld [vmem:[%s1550_s1 + $0x1a8] sm:$0xff]  ;;  %v68_v35 = vld [vmem:[%s1550_s1 + $0xb0] sm:$0xff] }
   0x8   :  { %917 = vmatprep.subr.bf16.mxu1 %v916_v17  ;;  %v50_v29 = vld [vmem:[%s1550_s1 + $0x20] sm:$0xff]  ;;  %v920_v30 = vpack.c.bf16 %v99_v28, %v98_v27  ;;  %v51_v31 = vld [vmem:[%s1550_s1 + $0x28] sm:$0xff]  ;;  %v69_v36 = vld [vmem:[%s1550_s1 + $0xb8] sm:$0xff] }
   0x9   :  { %v82_v32 = vld [vmem:[%s1550_s1 + $0x120] sm:$0xff]  ;;  %v83_v33 = vld [vmem:[%s1550_s1 + $0x128] sm:$0xff]  ;;  %v890_v34 = vpack.c.bf16 %v51_v31, %v50_v29  ;;  %v100_v37 = vld [vmem:[%s1550_s1 + $0x1b0] sm:$0xff]  ;;  %v892_v39 = vpack.c.bf16 %v69_v36, %v68_v35 }
   0xa   :  { %887 = vmatpush3.bf16.msra.mxu0 %v886_v21  ;;  %v922_v38 = vpack.c.bf16 %v83_v33, %v82_v32  ;;  %v101_v40 = vld [vmem:[%s1550_s1 + $0x1b8] sm:$0xff]  ;;  %v52_v41 = vld [vmem:[%s1550_s1 + $0x30] sm:$0xff]  ;;  %v70_v46 = vld [vmem:[%s1550_s1 + $0xc0] sm:$0xff] }
   0xb   :  { %919 = vmatpush3.bf16.msra.mxu1 %v918_v25  ;;  %889 = vmatprep.subr.bf16.mxu0 %v888_v26  ;;  %v53_v42 = vld [vmem:[%s1550_s1 + $0x38] sm:$0xff]  ;;  %v924_v43 = vpack.c.bf16 %v101_v40, %v100_v37  ;;  %v84_v44 = vld [vmem:[%s1550_s1 + $0x130] sm:$0xff]  ;;  %v71_v47 = vld [vmem:[%s1550_s1 + $0xc8] sm:$0xff] }
   0xc   :  { %921 = vmatprep.subr.bf16.mxu1 %v920_v30  ;;  %v85_v45 = vld [vmem:[%s1550_s1 + $0x138] sm:$0xff]  ;;  %v102_v48 = vld [vmem:[%s1550_s1 + $0x1c0] sm:$0xff]  ;;  %v103_v49 = vld [vmem:[%s1550_s1 + $0x1c8] sm:$0xff]  ;;  %v894_v50 = vpack.c.bf16 %v53_v42, %v52_v41  ;;  %v896_v52 = vpack.c.bf16 %v71_v47, %v70_v46 }
   0xd   :  { %v926_v51 = vpack.c.bf16 %v85_v45, %v84_v44  ;;  %v54_v53 = vld [vmem:[%s1550_s1 + $0x40] sm:$0xff]  ;;  %v55_v54 = vld [vmem:[%s1550_s1 + $0x48] sm:$0xff]  ;;  %v928_v56 = vpack.c.bf16 %v103_v49, %v102_v48  ;;  %v72_v58 = vld [vmem:[%s1550_s1 + $0xd0] sm:$0xff] }
   0xe   :  { %891 = vmatpush3.bf16.msra.mxu0 %v890_v34  ;;  %v86_v55 = vld [vmem:[%s1550_s1 + $0x140] sm:$0xff]  ;;  %v87_v57 = vld [vmem:[%s1550_s1 + $0x148] sm:$0xff]  ;;  %v73_v59 = vld [vmem:[%s1550_s1 + $0xd8] sm:$0xff]  ;;  %v898_v62 = vpack.c.bf16 %v55_v54, %v54_v53 }
   0xf   :  { %923 = vmatpush3.bf16.msra.mxu1 %v922_v38  ;;  %893 = vmatprep.subr.bf16.mxu0 %v892_v39  ;;  %v104_v60 = vld [vmem:[%s1550_s1 + $0x1d0] sm:$0xff]  ;;  %v105_v61 = vld [vmem:[%s1550_s1 + $0x1d8] sm:$0xff]  ;;  %v930_v63 = vpack.c.bf16 %v87_v57, %v86_v55  ;;  %v900_v0 = vpack.c.bf16 %v73_v59, %v72_v58  ;;  %v74_v6 = vld [vmem:[%s1550_s1 + $0xe0] sm:$0xff] }
  0x10   :  { %925 = vmatprep.subr.bf16.mxu1 %v924_v43  ;;  %v56_v1 = vld [vmem:[%s1550_s1 + $0x50] sm:$0xff]  ;;  %v57_v2 = vld [vmem:[%s1550_s1 + $0x58] sm:$0xff]  ;;  %v932_v4 = vpack.c.bf16 %v105_v61, %v104_v60  ;;  %v75_v7 = vld [vmem:[%s1550_s1 + $0xe8] sm:$0xff] }
  0x11   :  { %v88_v3 = vld [vmem:[%s1550_s1 + $0x150] sm:$0xff]  ;;  %v89_v5 = vld [vmem:[%s1550_s1 + $0x158] sm:$0xff]  ;;  %v106_v8 = vld [vmem:[%s1550_s1 + $0x1e0] sm:$0xff]  ;;  %v902_v10 = vpack.c.bf16 %v57_v2, %v56_v1  ;;  %v904_v14 = vpack.c.bf16 %v75_v7, %v74_v6 }
  0x12   :  { %895 = vmatpush3.bf16.msra.mxu0 %v894_v50  ;;  %v107_v9 = vld [vmem:[%s1550_s1 + $0x1e8] sm:$0xff]  ;;  %v58_v11 = vld [vmem:[%s1550_s1 + $0x60] sm:$0xff]  ;;  %v934_v13 = vpack.c.bf16 %v89_v5, %v88_v3  ;;  %v25_v17 = vld [vmem:[%s1551_s0 + $0x18] sm:$0xff] }
  0x13   :  { %927 = vmatpush3.bf16.msra.mxu1 %v926_v51  ;;  %897 = vmatprep.subr.bf16.mxu0 %v896_v52  ;;  %v59_v12 = vld [vmem:[%s1550_s1 + $0x68] sm:$0xff]  ;;  %v90_v15 = vld [vmem:[%s1550_s1 + $0x160] sm:$0xff]  ;;  %v936_v18 = vpack.c.bf16 %v107_v9, %v106_v8  ;;  %v76_v20 = vld [vmem:[%s1550_s1 + $0xf0] sm:$0xff] }
  0x14   :  { %929 = vmatprep.subr.bf16.mxu1 %v928_v56  ;;  %v23_v16 = vld [vmem:[%s1551_s0 + $0x8] sm:$0xff]  ;;  %v77_v21 = vld [vmem:[%s1550_s1 + $0xf8] sm:$0xff]  ;;  %v108_v22 = vld [vmem:[%s1550_s1 + $0x1f0] sm:$0xff]  ;;  %318 = vmatprep.mubr.f32.mxu1 %v25_v17  ;;  %v906_v24 = vpack.c.bf16 %v59_v12, %v58_v11 }
  0x15   :  { %v91_v19 = vld [vmem:[%s1550_s1 + $0x168] sm:$0xff]  ;;  %238 = vmatprep.mubr.f32.mxu0 %v23_v16  ;;  %v109_v23 = vld [vmem:[%s1550_s1 + $0x1f8] sm:$0xff]  ;;  %v908_v26 = vpack.c.bf16 %v77_v21, %v76_v20  ;;  %v60_v27 = vld [vmem:[%s1550_s1 + $0x70] sm:$0xff] }
  0x16   :  { %899 = vmatpush3.bf16.msra.mxu0 %v898_v62  ;;  %v938_v25 = vpack.c.bf16 %v91_v19, %v90_v15  ;;  %v61_v28 = vld [vmem:[%s1550_s1 + $0x78] sm:$0xff]  ;;  %v92_v29 = vld [vmem:[%s1550_s1 + $0x170] sm:$0xff]  ;;  %v940_v30 = vpack.c.bf16 %v109_v23, %v108_v22  ;;  %v126_v32 = vld [vmem:[%s1550_s1 + $0x280] sm:$0xff] }
  0x17   :  { %931 = vmatpush3.bf16.msra.mxu1 %v930_v63  ;;  %901 = vmatprep.subr.bf16.mxu0 %v900_v0  ;;  %v93_v31 = vld [vmem:[%s1550_s1 + $0x178] sm:$0xff]  ;;  %v127_v33 = vld [vmem:[%s1550_s1 + $0x288] sm:$0xff]  ;;  %v158_v34 = vld [vmem:[%s1550_s1 + $0x380] sm:$0xff]  ;;  %v910_v36 = vpack.c.bf16 %v61_v28, %v60_v27 }
  0x18   :  { %933 = vmatprep.subr.bf16.mxu1 %v932_v4  ;;  %v159_v35 = vld [vmem:[%s1550_s1 + $0x388] sm:$0xff]  ;;  %v942_v37 = vpack.c.bf16 %v93_v31, %v92_v29  ;;  %v944_v38 = vpack.c.bf16 %v127_v33, %v126_v32  ;;  %v110_v39 = vld [vmem:[%s1550_s1 + $0x200] sm:$0xff]  ;;  %v128_v44 = vld [vmem:[%s1550_s1 + $0x290] sm:$0xff] }
  0x19   :  { %v111_v40 = vld [vmem:[%s1550_s1 + $0x208] sm:$0xff]  ;;  %v142_v41 = vld [vmem:[%s1550_s1 + $0x300] sm:$0xff]  ;;  %v976_v42 = vpack.c.bf16 %v159_v35, %v158_v34  ;;  %v129_v45 = vld [vmem:[%s1550_s1 + $0x298] sm:$0xff] }
  0x1a   :  { %903 = vmatpush3.bf16.msra.mxu0 %v902_v10  ;;  %v143_v43 = vld [vmem:[%s1550_s1 + $0x308] sm:$0xff]  ;;  %v160_v46 = vld [vmem:[%s1550_s1 + $0x390] sm:$0xff]  ;;  %v161_v47 = vld [vmem:[%s1550_s1 + $0x398] sm:$0xff]  ;;  %v946_v50 = vpack.c.bf16 %v111_v40, %v110_v39  ;;  %v948_v52 = vpack.c.bf16 %v129_v45, %v128_v44 }
  0x1b   :  { %935 = vmatpush3.bf16.msra.mxu1 %v934_v13  ;;  %905 = vmatprep.subr.bf16.mxu0 %v904_v14  ;;  %v22_v48 = vld [vmem:[%s1551_s0] sm:$0xff]  ;;  %v24_v49 = vld [vmem:[%s1551_s0 + $0x10] sm:$0xff]  ;;  %v978_v51 = vpack.c.bf16 %v143_v43, %v142_v41  ;;  %v113_v54 = vld [vmem:[%s1550_s1 + $0x218] sm:$0xff]  ;;  %v980_v56 = vpack.c.bf16 %v161_v47, %v160_v46 }
  0x1c   :  { %937 = vmatprep.subr.bf16.mxu1 %v936_v18  ;;  %v112_v53 = vld [vmem:[%s1550_s1 + $0x210] sm:$0xff]  ;;  %v145_v57 = vld [vmem:[%s1550_s1 + $0x318] sm:$0xff]  ;;  %v130_v58 = vld [vmem:[%s1550_s1 + $0x2a0] sm:$0xff] }
  0x1d   :  { %v144_v55 = vld [vmem:[%s1550_s1 + $0x310] sm:$0xff]  ;;  %v131_v59 = vld [vmem:[%s1550_s1 + $0x2a8] sm:$0xff]  ;;  %v162_v60 = vld [vmem:[%s1550_s1 + $0x3a0] sm:$0xff]  ;;  %v950_v62 = vpack.c.bf16 %v113_v54, %v112_v53 }
  0x1e   :  { %907 = vmatpush3.bf16.msra.mxu0 %v906_v24  ;;  %v163_v61 = vld [vmem:[%s1550_s1 + $0x3a8] sm:$0xff]  ;;  %v114_v63 = vld [vmem:[%s1550_s1 + $0x220] sm:$0xff]  ;;  %v982_v2 = vpack.c.bf16 %v145_v57, %v144_v55  ;;  %v952_v3 = vpack.c.bf16 %v131_v59, %v130_v58  ;;  %v132_v5 = vld [vmem:[%s1550_s1 + $0x2b0] sm:$0xff] }
  0x1f   :  { %939 = vmatpush3.bf16.msra.mxu1 %v938_v25  ;;  %909 = vmatprep.subr.bf16.mxu0 %v908_v26  ;;  %v115_v0 = vld [vmem:[%s1550_s1 + $0x228] sm:$0xff]  ;;  %v146_v1 = vld [vmem:[%s1550_s1 + $0x320] sm:$0xff]  ;;  %v133_v6 = vld [vmem:[%s1550_s1 + $0x2b8] sm:$0xff]  ;;  %v984_v7 = vpack.c.bf16 %v163_v61, %v162_v60 }
  0x20   :  { %941 = vmatprep.subr.bf16.mxu1 %v940_v30  ;;  %v147_v4 = vld [vmem:[%s1550_s1 + $0x328] sm:$0xff]  ;;  %v164_v8 = vld [vmem:[%s1550_s1 + $0x3b0] sm:$0xff]  ;;  %v33_v10 = vld [vmem:[%s1551_s0 + $0x58] sm:$0xff]  ;;  %v954_v14 = vpack.c.bf16 %v115_v0, %v114_v63  ;;  %v956_v19 = vpack.c.bf16 %v133_v6, %v132_v5 }
  0x21   :  { %v31_v9 = vld [vmem:[%s1551_s0 + $0x48] sm:$0xff]  ;;  %v165_v11 = vld [vmem:[%s1550_s1 + $0x3b8] sm:$0xff]  ;;  %v30_v12 = vld [vmem:[%s1551_s0 + $0x40] sm:$0xff]  ;;  %v986_v18 = vpack.c.bf16 %v147_v4, %v146_v1 }
  0x22   :  { %911 = vmatpush3.bf16.msra.mxu0 %v910_v36  ;;  %v32_v13 = vld [vmem:[%s1551_s0 + $0x50] sm:$0xff]  ;;  %v117_v16 = vld [vmem:[%s1550_s1 + $0x238] sm:$0xff]  ;;  %v134_v21 = vld [vmem:[%s1550_s1 + $0x2c0] sm:$0xff]  ;;  %v988_v23 = vpack.c.bf16 %v165_v11, %v164_v8 }
  0x23   :  { %943 = vmatpush3.bf16.msra.mxu1 %v942_v37  ;;  %945 = vmatprep.subr.bf16.mxu0 %v944_v38  ;;  %v116_v15 = vld [vmem:[%s1550_s1 + $0x230] sm:$0xff]  ;;  %v149_v20 = vld [vmem:[%s1550_s1 + $0x338] sm:$0xff]  ;;  %v135_v22 = vld [vmem:[%s1550_s1 + $0x2c8] sm:$0xff] }
  0x24   :  { %977 = vmatprep.subr.bf16.mxu1 %v976_v42  ;;  %v148_v17 = vld [vmem:[%s1550_s1 + $0x330] sm:$0xff]  ;;  %v166_v24 = vld [vmem:[%s1550_s1 + $0x3c0] sm:$0xff]  ;;  %v39_v25 = vld [vmem:[%s1551_s0 + $0x88] sm:$0xff]  ;;  %v958_v30 = vpack.c.bf16 %v117_v16, %v116_v15  ;;  %v960_v33 = vpack.c.bf16 %v135_v22, %v134_v21 }
  0x25   :  { %239 = vmatmul.mubr.f32.vlgmr.msra.gmra.mrb[0].mxu0 %v22_v48  ;;  %v41_v26 = vld [vmem:[%s1551_s0 + $0x98] sm:$0xff]  ;;  %v167_v27 = vld [vmem:[%s1550_s1 + $0x3c8] sm:$0xff]  ;;  %v38_v28 = vld [vmem:[%s1551_s0 + $0x80] sm:$0xff]  ;;  %v990_v32 = vpack.c.bf16 %v149_v20, %v148_v17 }
  0x26   :  { %319 = vmatmul.mubr.f32.vlgmr.msra.gmra.mrb[0].mxu1 %v24_v49  ;;  %947 = vmatpush3.bf16.msra.mxu0 %v946_v50  ;;  %v40_v29 = vld [vmem:[%s1551_s0 + $0x90] sm:$0xff]  ;;  %v118_v31 = vld [vmem:[%s1550_s1 + $0x240] sm:$0xff]  ;;  %v119_v34 = vld [vmem:[%s1550_s1 + $0x248] sm:$0xff]  ;;  %v992_v37 = vpack.c.bf16 %v167_v27, %v166_v24  ;;  %v1023_v27 = vmov 0.0|0.0  }
  0x27   :  { %979 = vmatpush3.bf16.msra.mxu1 %v978_v51  ;;  %949 = vmatprep.subr.bf16.mxu0 %v948_v52  ;;  %v150_v35 = vld [vmem:[%s1550_s1 + $0x340] sm:$0xff]  ;;  %v151_v36 = vld [vmem:[%s1550_s1 + $0x348] sm:$0xff]  ;;  %v136_v38 = vld [vmem:[%s1550_s1 + $0x2d0] sm:$0xff]  ;;  %v962_v44 = vpack.c.bf16 %v119_v34, %v118_v31  ;;  %v1025_v31 = vmov 0.0  }
  0x28   :  { %981 = vmatprep.subr.bf16.mxu1 %v980_v56  ;;  %243 = vmatprep.mubr.f32.mxu0 %v31_v9  ;;  %v137_v39 = vld [vmem:[%s1550_s1 + $0x2d8] sm:$0xff]  ;;  %v27_v40 = vld [vmem:[%s1551_s0 + $0x28] sm:$0xff]  ;;  %v168_v41 = vld [vmem:[%s1550_s1 + $0x3d0] sm:$0xff]  ;;  %v994_v45 = vpack.c.bf16 %v151_v36, %v150_v35 }
  0x29   :  { %323 = vmatprep.mubr.f32.mxu1 %v33_v10  ;;  %244 = vmatmul.mubr.f32.gmra.mrb[2].mxu0 %v30_v12  ;;  %v169_v42 = vld [vmem:[%s1550_s1 + $0x3d8] sm:$0xff]  ;;  %v964_v46 = vpack.c.bf16 %v137_v39, %v136_v38  ;;  %v120_v47 = vld [vmem:[%s1550_s1 + $0x250] sm:$0xff]  ;;  %v138_v52 = vld [vmem:[%s1550_s1 + $0x2e0] sm:$0xff] }
  0x2a   :  { %951 = vmatpush3.bf16.msra.mxu0 %v950_v62  ;;  %324 = vmatmul.mubr.f32.gmra.mrb[2].mxu1 %v32_v13  ;;  %v29_v43 = vld [vmem:[%s1551_s0 + $0x38] sm:$0xff]  ;;  %v152_v49 = vld [vmem:[%s1550_s1 + $0x350] sm:$0xff]  ;;  %v996_v50 = vpack.c.bf16 %v169_v42, %v168_v41  ;;  %v139_v53 = vld [vmem:[%s1550_s1 + $0x2e8] sm:$0xff] }
  0x2b   :  { %983 = vmatpush3.bf16.msra.mxu1 %v982_v2  ;;  %953 = vmatprep.subr.bf16.mxu0 %v952_v3  ;;  %v121_v48 = vld [vmem:[%s1550_s1 + $0x258] sm:$0xff]  ;;  %v170_v54 = vld [vmem:[%s1550_s1 + $0x3e0] sm:$0xff]  ;;  %v171_v55 = vld [vmem:[%s1550_s1 + $0x3e8] sm:$0xff]  ;;  %v968_v58 = vpack.c.bf16 %v139_v53, %v138_v52 }
  0x2c   :  { %985 = vmatprep.subr.bf16.mxu1 %v984_v7  ;;  %248 = vmatprep.mubr.f32.mxu0 %v39_v25  ;;  %v153_v51 = vld [vmem:[%s1550_s1 + $0x358] sm:$0xff]  ;;  %v966_v56 = vpack.c.bf16 %v121_v48, %v120_v47  ;;  %v122_v59 = vld [vmem:[%s1550_s1 + $0x260] sm:$0xff]  ;;  %v123_v60 = vld [vmem:[%s1550_s1 + $0x268] sm:$0xff]  ;;  %v1000_v62 = vpack.c.bf16 %v171_v55, %v170_v54 }
  0x2d   :  { %328 = vmatprep.mubr.f32.mxu1 %v41_v26  ;;  %249 = vmatmul.mubr.f32.gmra.mrb[4].mxu0 %v38_v28  ;;  %v998_v57 = vpack.c.bf16 %v153_v51, %v152_v49  ;;  %v154_v61 = vld [vmem:[%s1550_s1 + $0x360] sm:$0xff]  ;;  %v155_v63 = vld [vmem:[%s1550_s1 + $0x368] sm:$0xff]  ;;  %v140_v0 = vld [vmem:[%s1550_s1 + $0x2f0] sm:$0xff]  ;;  %v970_v4 = vpack.c.bf16 %v123_v60, %v122_v59 }
  0x2e   :  { %955 = vmatpush3.bf16.msra.mxu0 %v954_v14  ;;  %329 = vmatmul.mubr.f32.gmra.mrb[4].mxu1 %v40_v29  ;;  %v141_v1 = vld [vmem:[%s1550_s1 + $0x2f8] sm:$0xff]  ;;  %v172_v2 = vld [vmem:[%s1550_s1 + $0x3f0] sm:$0xff]  ;;  %v1002_v5 = vpack.c.bf16 %v155_v63, %v154_v61  ;;  %v26_v14 = vld [vmem:[%s1551_s0 + $0x20] sm:$0xff] }
  0x2f   :  { %987 = vmatpush3.bf16.msra.mxu1 %v986_v18  ;;  %957 = vmatprep.subr.bf16.mxu0 %v956_v19  ;;  %v173_v3 = vld [vmem:[%s1550_s1 + $0x3f8] sm:$0xff]  ;;  %v972_v6 = vpack.c.bf16 %v141_v1, %v140_v0  ;;  %v124_v7 = vld [vmem:[%s1550_s1 + $0x270] sm:$0xff]  ;;  %v35_v16 = vld [vmem:[%s1551_s0 + $0x68] sm:$0xff] }
  0x30   :  { %989 = vmatprep.subr.bf16.mxu1 %v988_v23  ;;  %398 = vmatprep.mubr.f32.mxu0 %v27_v40  ;;  %v125_v8 = vld [vmem:[%s1550_s1 + $0x278] sm:$0xff]  ;;  %v1004_v9 = vpack.c.bf16 %v173_v3, %v172_v2  ;;  %v156_v10 = vld [vmem:[%s1550_s1 + $0x370] sm:$0xff]  ;;  %v34_v18 = vld [vmem:[%s1551_s0 + $0x60] sm:$0xff] }
  0x31   :  { %478 = vmatprep.mubr.f32.mxu1 %v29_v43  ;;  %v157_v11 = vld [vmem:[%s1550_s1 + $0x378] sm:$0xff]  ;;  %v974_v12 = vpack.c.bf16 %v125_v8, %v124_v7  ;;  %v28_v15 = vld [vmem:[%s1551_s0 + $0x30] sm:$0xff]  ;;  %v43_v20 = vld [vmem:[%s1551_s0 + $0xa8] sm:$0xff] }
  0x32   :  { %959 = vmatpush3.bf16.msra.mxu0 %v958_v30  ;;  %v1006_v13 = vpack.c.bf16 %v157_v11, %v156_v10  ;;  %v37_v17 = vld [vmem:[%s1551_s0 + $0x78] sm:$0xff]  ;;  %v36_v19 = vld [vmem:[%s1551_s0 + $0x70] sm:$0xff]  ;;  %v42_v22 = vld [vmem:[%s1551_s0 + $0xa0] sm:$0xff] }
  0x33   :  { %991 = vmatpush3.bf16.msra.mxu1 %v990_v32  ;;  %961 = vmatprep.subr.bf16.mxu0 %v960_v33  ;;  %v45_v21 = vld [vmem:[%s1551_s0 + $0xb8] sm:$0xff]  ;;  %v44_v23 = vld [vmem:[%s1551_s0 + $0xb0] sm:$0xff]  ;;  %v513_v24 = vld [vmem:[%s1552_s2] sm:$0xff] }
  0x34   :  { %993 = vmatprep.subr.bf16.mxu1 %v992_v37  ;;  %v514_v25 = vld [vmem:[%s1552_s2 + $0x8] sm:$0xff]  ;;  %v515_v28 = vld [vmem:[%s1552_s2 + $0x10] sm:$0xff]  ;;  %v516_v29 = vld [vmem:[%s1552_s2 + $0x18] sm:$0xff] }
  0x35   :  { %v1015_v26 = vpack.c.bf16 %v514_v25, %v513_v24  ;;  %v1018_v30 = vpack.c.bf16 %v516_v29, %v515_v28  ;;  %v517_v32 = vld [vmem:[%s1553_s3] sm:$0xff]  ;;  %v518_v33 = vld [vmem:[%s1553_s3 + $0x8] sm:$0xff]  ;;  %v519_v35 = vld [vmem:[%s1553_s3 + $0x10] sm:$0xff] }
  0x36   :  { %963 = vmatpush3.bf16.msra.mxu0 %v962_v44  ;;  %v1009_v34 = vpack.c.bf16 %v518_v33, %v517_v32  ;;  %v520_v36 = vld [vmem:[%s1553_s3 + $0x18] sm:$0xff] }
  0x37   :  { %995 = vmatpush3.bf16.msra.mxu1 %v994_v45  ;;  %965 = vmatprep.subr.bf16.mxu0 %v964_v46  ;;  %v1012_v37 = vpack.c.bf16 %v520_v36, %v519_v35 }
  0x38   :  { %997 = vmatprep.subr.bf16.mxu1 %v996_v50 }
  0x3a   :  { %967 = vmatpush3.bf16.msra.mxu0 %v966_v56 }
  0x3b   :  { %999 = vmatpush3.bf16.msra.mxu1 %v998_v57  ;;  %969 = vmatprep.subr.bf16.mxu0 %v968_v58 }
  0x3c   :  { %1001 = vmatprep.subr.bf16.mxu1 %v1000_v62 }
  0x3e   :  { %971 = vmatpush3.bf16.msra.mxu0 %v970_v4 }
  0x3f   :  { %1003 = vmatpush3.bf16.msra.mxu1 %v1002_v5  ;;  %973 = vmatprep.subr.bf16.mxu0 %v972_v6 }
  0x40   :  { %1005 = vmatprep.subr.bf16.mxu1 %v1004_v9 }
  0x42   :  { %975 = vmatpush3.bf16.msra.mxu0 %v974_v12 }
  0x43   :  { %1007 = vmatpush3.bf16.msra.mxu1 %v1006_v13  ;;  %1008 = vmatprep.subr.bf16.mxu0 %v1023_v27 }
  0x44   :  { %1014 = vmatprep.subr.bf16.mxu1 %v1023_v27 }
  0x45   :  { %399 = vmatmul.mubr.f32.vlgmr.msra.gmra.mrb[6].mxu0 %v26_v14 }
  0x46   :  { %479 = vmatmul.mubr.f32.vlgmr.msra.gmra.mrb[6].mxu1 %v28_v15  ;;  %403 = vmatprep.mubr.f32.mxu0 %v35_v16 }
  0x47   :  { %483 = vmatprep.mubr.f32.mxu1 %v37_v17  ;;  %1016 = vmatpush3.bf16.msra.mxu1 %v1015_v26 }
  0x48   :  { %1017 = vmatprep.subr.bf16.mxu1 %v1023_v27  ;;  %1010 = vmatpush3.bf16.msra.mxu0 %v1009_v34 }
  0x49   :  { %404 = vmatmul.mubr.f32.gmra.mrb[8].mxu0 %v34_v18  ;;  %1011 = vmatprep.subr.bf16.mxu0 %v1023_v27 }
  0x4a   :  { %484 = vmatmul.mubr.f32.gmra.mrb[8].mxu1 %v36_v19  ;;  %408 = vmatprep.mubr.f32.mxu0 %v43_v20 }
  0x4b   :  { %488 = vmatprep.mubr.f32.mxu1 %v45_v21  ;;  %1019 = vmatpush3.bf16.msra.mxu1 %v1018_v30 }
  0x4c   :  { %1013 = vmatpush3.bf16.msra.mxu0 %v1012_v37  ;;  %v10_v37 = vstv %s1554_s4 }
  0x4d   :  { %409 = vmatmul.mubr.f32.gmra.mrb[10].mxu0 %v42_v22  ;;  %11 = vst [vmem:[#allocation2] sm:$0x1] %v10_v37 }
  0x4e   :  { %489 = vmatmul.mubr.f32.gmra.mrb[10].mxu1 %v44_v23  ;;  %866 = vmatprep.mubr.msk.f32.mxu0 %vm1024_vm0, %v1025_v31 }
  0x4f   :  { %877 = vmatprep.mubr.msk.f32.mxu1 %vm1024_vm0, %v1025_v31 }
  0xf8   :  { %v716_v38 = vpop.f32.mrb[0].mxu0 }
  0xf9   :  { %v757_v39 = vpop.f32.mrb[0].mxu1  ;;  %v717_v40 = vpop.f32.mrb[1].mxu0 }
  0xfa   :  { %v718_v41 = vadd.f32 %v717_v40, %v716_v38  ;;  %v758_v42 = vpop.f32.mrb[1].mxu1 }
  0xfb   :  { %v759_v43 = vadd.f32 %v758_v42, %v757_v39 }
  0xfc   :  { %v719_v47 = vpop.f32.mrb[2].mxu0 }
  0xfd   :  { %v321_v44 = vadd.f32 %v759_v43, %v718_v41  ;;  %v760_v45 = vpop.f32.mrb[2].mxu1  ;;  %v720_v49 = vpop.f32.mrb[3].mxu0  ;;  %v683_v41 = vld [vmem:[#allocation2] ss:$0 sm:$0xff] }
  0xfe   :  { %v761_v46 = vpop.f32.mrb[3].mxu1  ;;  %v721_v50 = vadd.f32 %v720_v49, %v719_v47 }
  0xff   :  { %v762_v48 = vadd.f32 %v761_v46, %v760_v45 }
 0x100   :  { %v722_v54 = vpop.f32.mrb[4].mxu0 }
 0x101   :  { %v763_v51 = vpop.f32.mrb[4].mxu1  ;;  %v326_v53 = vadd.f32 %v762_v48, %v721_v50  ;;  %v723_v56 = vpop.f32.mrb[5].mxu0 }
 0x102   :  { %v764_v52 = vpop.f32.mrb[5].mxu1  ;;  %v724_v57 = vadd.f32 %v723_v56, %v722_v54 }
 0x103   :  { %v765_v55 = vadd.f32 %v764_v52, %v763_v51 }
 0x105   :  { %v331_v58 = vadd.f32 %v765_v55, %v724_v57 }
 0x118   :  { %v798_v59 = vpop.f32.mrb[6].mxu0 }
 0x119   :  { %v799_v60 = vpop.f32.mrb[7].mxu0  ;;  %v839_v61 = vpop.f32.mrb[6].mxu1 }
 0x11a   :  { %v800_v62 = vadd.f32 %v799_v60, %v798_v59  ;;  %v840_v63 = vpop.f32.mrb[7].mxu1 }
 0x11b   :  { %v841_v0 = vadd.f32 %v840_v63, %v839_v61 }
 0x11c   :  { %v401_v1 = vadd.f32 %v800_v62, %v321_v44  ;;  %v801_v2 = vpop.f32.mrb[8].mxu0 }
 0x11d   :  { %v802_v3 = vpop.f32.mrb[9].mxu0  ;;  %v842_v4 = vpop.f32.mrb[8].mxu1 }
 0x11e   :  { %v481_v5 = vadd.f32 %v841_v0, %v401_v1  ;;  %v803_v6 = vadd.f32 %v802_v3, %v801_v2  ;;  %v843_v7 = vpop.f32.mrb[9].mxu1 }
 0x11f   :  { %v844_v8 = vadd.f32 %v843_v7, %v842_v4 }
 0x120   :  { %v406_v9 = vadd.f32 %v803_v6, %v326_v53  ;;  %v804_v10 = vpop.f32.mrb[10].mxu0  ;;  %v495_v17 = vsel %vm494_vm1, %v481_v5, 0.0 }
 0x121   :  { %v805_v11 = vpop.f32.mrb[11].mxu0  ;;  %v845_v12 = vpop.f32.mrb[10].mxu1 }
 0x122   :  { %v486_v13 = vadd.f32 %v844_v8, %v406_v9  ;;  %v806_v14 = vadd.f32 %v805_v11, %v804_v10  ;;  %v846_v15 = vpop.f32.mrb[11].mxu1 }
 0x123   :  { %v847_v16 = vadd.f32 %v846_v15, %v845_v12 }
 0x124   :  { %v496_v18 = vsel %vm494_vm1, %v486_v13, 0.0  ;;  %v411_v19 = vadd.f32 %v806_v14, %v331_v58 }
 0x125   :  { %v497_v20 = vadd.f32 %v496_v18, %v495_v17 }
 0x126   :  { %v491_v21 = vadd.f32 %v847_v16, %v411_v19 }
 0x128   :  { %v498_v22 = vsel %vm494_vm1, %v491_v21, 0.0 }
 0x129   :  { %v499_v23 = vadd.f32 %v498_v22, %v497_v20 }
 0x12b   :  { %v500_v24 = vmul.f32 0.33333334, %v499_v23 }
 0x12d   :  { %v501_v25 = vsub.f32 %v481_v5, %v500_v24  ;;  %v502_v26 = vsub.f32 %v486_v13, %v500_v24  ;;  %v503_v27 = vsub.f32 %v491_v21, %v500_v24  ;;  %878 = vmatmul.mubr.msk.f32.vlgmr.msra.gmra.mrb[12].mxu1 %vm494_vm1, %v500_v24 }
 0x12f   :  { %v504_v28 = vmul.f32 %v501_v25, %v501_v25  ;;  %v505_v29 = vmul.f32 %v502_v26, %v502_v26  ;;  %v506_v30 = vmul.f32 %v503_v27, %v503_v27 }
 0x131   :  { %v507_v31 = vsel %vm494_vm1, %v504_v28, 0.0  ;;  %v508_v32 = vsel %vm494_vm1, %v505_v29, 0.0  ;;  %v510_v34 = vsel %vm494_vm1, %v506_v30, 0.0 }
 0x132   :  { %v509_v33 = vadd.f32 %v508_v32, %v507_v31 }
 0x134   :  { %v511_v35 = vadd.f32 %v510_v34, %v509_v33 }
 0x136   :  { %v512_v36 = vmul.f32 0.5, %v511_v35 }
 0x138   :  { %867 = vmatmul.mubr.msk.f32.vlgmr.msra.gmra.mrb[12].mxu0 %vm494_vm1, %v512_v36 }
 0x200   :  { %v663_v38 = vpop.f32.mrb[12].mxu1 }
 0x201   :  { %v879_v39 = vpop.f32.mrb[13].mxu1 }
 0x20b   :  { %v590_v40 = vpop.f32.mrb[12].mxu0 }
 0x20c   :  { %v664_v42 = vadd.f32 %v663_v38, %v590_v40  ;;  %v868_v43 = vpop.f32.mrb[13].mxu0 }
 0x20e   :  { %v674_v44 = vadd.f32 %v683_v41, %v664_v42 }
 0x210   :  { %676 = vst.msk [vmem:[%s1555_s5] sm:$0xff] %vm675_vm2, %v674_v44 }

</bundles_post_ra>
